<compile_context>
chip_gen: v6e
topology: v6e:2x2x1
jax: 0.10.0
libtpu: 0.0.40
codegen_flags: <defaults>
</compile_context>

<pallas_src>
import math

import jax
import jax.numpy as jnp
from jax.experimental import pallas as pl
from jax.experimental.pallas import tpu as pltpu


def _round_up(x, m):
    return ((x + m - 1) // m) * m


def _is_v5e():
    try:
        kind = jax.devices()[0].device_kind.lower()
        return ("v5 lite" in kind) or ("v5e" in kind) or ("v5litepod" in kind)
    except Exception:  # defensive: never fail the forward pass on a HW query
        return False


def _make_tcn_kernel(K, stride, Tt, V_pad, C_in, C_out, fuse_taps):
    """Build the kernel with all shape/static params closed over."""
    rows = Tt * V_pad

    def _tap(x_ref, k):
        if stride == 1:
            return x_ref[0, 0, pl.ds(k, Tt), :, :]
        # TODO(synk): verify strided pl.ds on the non-minor T axis lowers
        # without a relayout copy for stride > 1 (correctness is unaffected).
        return x_ref[0, 0, pl.ds(k, Tt, stride), :, :]

    def kernel(x_ref, w_ref, b_ref, o_ref):
        # x_ref: (1, 1, L, V_pad, C_in)  bf16 haloed input window
        # w_ref: (K*C_in, C_out)         bf16 conv weight, BN scale folded in
        # b_ref: (1, C_out)              f32  folded BN shift (+ conv bias)
        # o_ref: (1, Tt, V_pad, C_out)   output tile
        if fuse_taps:
            # One deep contraction: concat the K shifted taps on the lane axis.
            lhs = jnp.concatenate([_tap(x_ref, k) for k in range(K)], axis=-1)
            acc = jnp.dot(lhs.reshape(rows, K * C_in), w_ref[...],
                          preferred_element_type=jnp.float32)
        else:
            acc = jnp.zeros((rows, C_out), jnp.float32)
            for k in range(K):  # K small & static -> fully unrolled
                acc = acc + jnp.dot(_tap(x_ref, k).reshape(rows, C_in),
                                    w_ref[pl.ds(k * C_in, C_in), :],
                                    preferred_element_type=jnp.float32)
        acc = acc + b_ref[...]                      # folded BN shift epilogue
        o_ref[...] = acc.reshape(1, Tt, V_pad, C_out).astype(o_ref.dtype)

    return kernel


def _choose_t_tile(T_out, V_pad, cin_p, cout_p, stride, K, out_itemsize):
    # Target ~2048 output rows (T*V) per tile (>=512 already ~85% of HBM
    # roofline); keep double-buffered in+out blocks under ~24 MiB so the
    # whole pipeline fits comfortably under a 48 MiB scoped-VMEM cap (v7x).
    tt = max(1, min(T_out, max(1, 2048 // max(V_pad, 1))))

    def blk_bytes(t):
        L = (t - 1) * stride + K
        return (2 * L * V_pad * cin_p * 2              # bf16 in, 2 buffers
                + 2 * t * V_pad * cout_p * out_itemsize)

    while tt > 1 and blk_bytes(tt) > 24 * 2**20:
        tt = max(1, tt // 2)
    return tt


def unit_tcn_forward(x, weight, conv_bias, gamma, beta, running_mean,
                     running_var, *, kernel_size=5, stride=1, eps=1e-5,
                     out_dtype=jnp.bfloat16):
    """bn(conv(x)) with inference-mode BatchNorm, fused in one Pallas kernel.

    x:       (N, C_in, T, V)  float32 (PyTorch NCHW)
    weight:  (C_out, C_in, K, 1)
    returns: (N, C_out, T_out, V) in `out_dtype` (bf16 by default to halve the
             output HBM stream; pass jnp.float32 for exact PyTorch dtype parity).
    """
    N, C_in, T, V = x.shape
    C_out = weight.shape[0]
    K = kernel_size
    pad = (K - 1) // 2
    T_out = (T + 2 * pad - K) // stride + 1

    out_itemsize = jnp.dtype(out_dtype).itemsize
    cin_p = _round_up(C_in, 128)          # lane padding
    cout_p = _round_up(C_out, 128)
    V_pad = _round_up(V, 16)              # sublane padding (bf16 packing)

    # ---- T tiling (second grid axis) ----------------------------------------
    Tt = _choose_t_tile(T_out, V_pad, cin_p, cout_p, stride, K, out_itemsize)
    num_t = pl.cdiv(T_out, Tt)
    T_out_pad = num_t * Tt
    L = (Tt - 1) * stride + K             # haloed input rows per tile
    T_need = (T_out_pad - 1) * stride + K # total padded input rows needed

    # ---- wrapper-side layout + parameter folding ----------------------------
    # NCHW -> (N, T, V, C): channels on the lane axis; bf16 input stream.
    x_tvc = jnp.transpose(x, (0, 2, 3, 1)).astype(jnp.bfloat16)
    x_p = jnp.pad(x_tvc, ((0, 0), (pad, pad), (0, V_pad - V), (0, 0)))
    T_have = T + 2 * pad
    if T_need > T_have:
        x_p = jnp.pad(x_p, ((0, 0), (0, T_need - T_have), (0, 0), (0, 0)))
    elif T_need < T_have:
        x_p = x_p[:, :T_need]

    if num_t == 1:
        x_win = x_p[:, None]                                  # (N,1,L,V_pad,C_in)
    else:
        # Overlapping haloed windows -- only materialized when T is tiled.
        idx = (jnp.arange(num_t) * (Tt * stride))[:, None] + jnp.arange(L)[None, :]
        x_win = jnp.take(x_p, idx.reshape(-1), axis=1)
        x_win = x_win.reshape(N, num_t, L, V_pad, C_in)

    # Fold BN into a per-output-channel affine: y = conv(x) * scale + shift.
    scale = gamma / jnp.sqrt(running_var + eps)               # (C_out,)
    shift = (conv_bias - running_mean) * scale + beta         # (C_out,)
    w = jnp.transpose(weight[..., 0], (2, 1, 0)) * scale[None, None, :]
    w = w.reshape(K * C_in, C_out).astype(jnp.bfloat16)       # tap-major rows
    shift2 = shift.reshape(1, C_out).astype(jnp.float32)

    # Fuse the K taps into one deep contraction where it pays off.
    fuse_taps = (C_in < 256) and not (_is_v5e() and C_in >= 128)

    # ---- padded VMEM budget (double-buffered blocks + weights + bias) -------
    need = (2 * L * V_pad * cin_p * 2                       # input blocks (bf16)
            + 2 * Tt * V_pad * cout_p * out_itemsize        # output blocks
            + 2 * _round_up(K * C_in, 16) * cout_p * 2      # weights
            + 2 * 8 * cout_p * 4)                           # bias
    vmem_limit = int(min(48 * 2**20, max(32 * 2**20, 2 * need)))

    kernel = _make_tcn_kernel(K, stride, Tt, V_pad, C_in, C_out, fuse_taps)

    # TODO(synk): weight/bias blocks are grid-invariant; single-buffer them
    # (e.g. pipeline_mode=pl.Buffered(1)) for a little extra VMEM headroom.
    out = pl.pallas_call(
        kernel,
        out_shape=jax.ShapeDtypeStruct((N, T_out_pad, V_pad, C_out), out_dtype),
        grid_spec=pltpu.PrefetchScalarGridSpec(
            num_scalar_prefetch=0,
            grid=(N, num_t),
            in_specs=[
                pl.BlockSpec((1, 1, L, V_pad, C_in),
                             lambda n, j: (n, j, 0, 0, 0)),
                pl.BlockSpec((K * C_in, C_out), lambda n, j: (0, 0)),
                pl.BlockSpec((1, C_out), lambda n, j: (0, 0)),
            ],
            out_specs=pl.BlockSpec((1, Tt, V_pad, C_out),
                                   lambda n, j: (n, j, 0, 0)),
        ),
        compiler_params=pltpu.CompilerParams(
            dimension_semantics=("parallel", "parallel"),
            vmem_limit_bytes=vmem_limit),
    )(x_win, w, shift2)

    # Drop T/V padding; channels-last -> NCHW (interface parity with PyTorch).
    out = out[:, :T_out, :V, :]
    return jnp.transpose(out, (0, 3, 1, 2))


def init_unit_tcn_params(key, in_channels, out_channels, kernel_size=5):
    """Deterministic init mirroring the PyTorch module's __init__."""
    # conv_init: kaiming_normal_(mode='fan_out') -> std = sqrt(2 / fan_out),
    # fan_out = out_channels * K * 1; conv bias init to 0.
    fan_out = out_channels * kernel_size * 1
    std = math.sqrt(2.0 / fan_out)
    weight = std * jax.random.normal(
        key, (out_channels, in_channels, kernel_size, 1), dtype=jnp.float32)
    conv_bias = jnp.zeros((out_channels,), jnp.float32)
    # bn_init(bn, 1): gamma=1, beta=0; fresh running stats: mean=0, var=1.
    gamma = jnp.ones((out_channels,), jnp.float32)
    beta = jnp.zeros((out_channels,), jnp.float32)
    running_mean = jnp.zeros((out_channels,), jnp.float32)
    running_var = jnp.ones((out_channels,), jnp.float32)
    return weight, conv_bias, gamma, beta, running_mean, running_var


if __name__ == "__main__":
    key = jax.random.PRNGKey(0)
    k_x, k_w = jax.random.split(key)

    N, C_in, T, V = 2, 4, 16, 16
    C_out, K, stride = 8, 5, 1

    x = jax.random.normal(k_x, (N, C_in, T, V), dtype=jnp.float32)
    params = init_unit_tcn_params(k_w, C_in, C_out, K)

    y = unit_tcn_forward(x, *params, kernel_size=K, stride=stride)
    y = jax.block_until_ready(y)

    # Cross-check against a pure-JAX f32 reference (conv + inference BN).
    weight, conv_bias, gamma, beta, rmean, rvar = params
    pad = (K - 1) // 2
    ref = jax.lax.conv_general_dilated(
        x, weight,
        window_strides=(stride, 1), padding=((pad, pad), (0, 0)),
        dimension_numbers=("NCHW", "OIHW", "NCHW"))
    ref = ref + conv_bias[None, :, None, None]
    scale = gamma / jnp.sqrt(rvar + 1e-5)
    ref = (ref - rmean[None, :, None, None]) * scale[None, :, None, None] \
        + beta[None, :, None, None]

    assert y.shape == (N, C_out, T, V), y.shape
    # bf16 inputs/weights/outputs with f32 MXU accumulation -> loosened
    # tolerance vs the pure-f32 reference.
    max_err = float(jnp.max(jnp.abs(y.astype(jnp.float32) - ref)))
    assert max_err < 6e-2, max_err

    print("KERNEL_OK")
</pallas_src>

<mosaic_0001>
module attributes {stable_mosaic.version = 11 : i64} {
  func.func @kernel(%arg0: i32, %arg1: i32, %arg2: memref<1x1x20x16x4xbf16, #tpu.memory_space<vmem>>, %arg3: memref<20x8xbf16, #tpu.memory_space<vmem>>, %arg4: memref<1x8xf32, #tpu.memory_space<vmem>>, %arg5: memref<1x16x16x8xbf16, #tpu.memory_space<vmem>>) attributes {dimension_semantics = [#tpu.dimension_semantics<parallel>, #tpu.dimension_semantics<parallel>], iteration_bounds = array<i64: 2, 1>, scalar_prefetch = 0 : i64, scratch_operands = 0 : i64, tpu.core_type = #tpu.core_type<tc>, window_params = [{transform_indices = @transform_0, window_bounds = array<i64: 1, 1, 20, 16, 4>}, {pipeline_mode = #tpu.pipeline_mode<synchronous>, transform_indices = @transform_1, window_bounds = array<i64: 20, 8>}, {pipeline_mode = #tpu.pipeline_mode<synchronous>, transform_indices = @transform_2, window_bounds = array<i64: 1, 8>}, {transform_indices = @transform_3, window_bounds = array<i64: 1, 16, 16, 8>}]} {
    %c0 = arith.constant 0 : index
    %c0_0 = arith.constant 0 : index
    %c0_1 = arith.constant 0 : index
    %c0_2 = arith.constant 0 : index
    %c0_3 = arith.constant 0 : index
    %0 = vector.load %arg2[%c0, %c0_0, %c0_1, %c0_2, %c0_3] : memref<1x1x20x16x4xbf16, #tpu.memory_space<vmem>>, vector<1x1x16x16x4xbf16>
    %1 = vector.shape_cast %0 : vector<1x1x16x16x4xbf16> to vector<16x16x4xbf16>
    %c0_4 = arith.constant 0 : index
    %c0_5 = arith.constant 0 : index
    %c1 = arith.constant 1 : index
    %c0_6 = arith.constant 0 : index
    %c0_7 = arith.constant 0 : index
    %2 = vector.load %arg2[%c0_4, %c0_5, %c1, %c0_6, %c0_7] : memref<1x1x20x16x4xbf16, #tpu.memory_space<vmem>>, vector<1x1x16x16x4xbf16>
    %3 = vector.shape_cast %2 : vector<1x1x16x16x4xbf16> to vector<16x16x4xbf16>
    %c0_8 = arith.constant 0 : index
    %c0_9 = arith.constant 0 : index
    %c2 = arith.constant 2 : index
    %c0_10 = arith.constant 0 : index
    %c0_11 = arith.constant 0 : index
    %4 = vector.load %arg2[%c0_8, %c0_9, %c2, %c0_10, %c0_11] : memref<1x1x20x16x4xbf16, #tpu.memory_space<vmem>>, vector<1x1x16x16x4xbf16>
    %5 = vector.shape_cast %4 : vector<1x1x16x16x4xbf16> to vector<16x16x4xbf16>
    %c0_12 = arith.constant 0 : index
    %c0_13 = arith.constant 0 : index
    %c3 = arith.constant 3 : index
    %c0_14 = arith.constant 0 : index
    %c0_15 = arith.constant 0 : index
    %6 = vector.load %arg2[%c0_12, %c0_13, %c3, %c0_14, %c0_15] : memref<1x1x20x16x4xbf16, #tpu.memory_space<vmem>>, vector<1x1x16x16x4xbf16>
    %7 = vector.shape_cast %6 : vector<1x1x16x16x4xbf16> to vector<16x16x4xbf16>
    %c0_16 = arith.constant 0 : index
    %c0_17 = arith.constant 0 : index
    %c4 = arith.constant 4 : index
    %c0_18 = arith.constant 0 : index
    %c0_19 = arith.constant 0 : index
    %8 = vector.load %arg2[%c0_16, %c0_17, %c4, %c0_18, %c0_19] : memref<1x1x20x16x4xbf16, #tpu.memory_space<vmem>>, vector<1x1x16x16x4xbf16>
    %9 = vector.shape_cast %8 : vector<1x1x16x16x4xbf16> to vector<16x16x4xbf16>
    %10 = tpu.concatenate %1, %3, %5, %7, %9 in 2 : vector<16x16x4xbf16>, vector<16x16x4xbf16>, vector<16x16x4xbf16>, vector<16x16x4xbf16>, vector<16x16x4xbf16> -> vector<16x16x20xbf16>
    %11 = vector.shape_cast %10 : vector<16x16x20xbf16> to vector<256x20xbf16>
    %c0_20 = arith.constant 0 : index
    %c0_21 = arith.constant 0 : index
    %12 = vector.load %arg3[%c0_20, %c0_21] : memref<20x8xbf16, #tpu.memory_space<vmem>>, vector<20x8xbf16>
    %cst = arith.constant dense<0.000000e+00> : vector<256x8xf32>
    %13 = tpu.matmul %11, %12, %cst {dimension_numbers = #tpu.dot_dimension_numbers<[1], [0], [0], [1], [0, 0, 1, 1], [], []>} : vector<256x20xbf16>, vector<20x8xbf16>, vector<256x8xf32> -> vector<256x8xf32>
    %c0_22 = arith.constant 0 : index
    %c0_23 = arith.constant 0 : index
    %14 = vector.load %arg4[%c0_22, %c0_23] : memref<1x8xf32, #tpu.memory_space<vmem>>, vector<1x8xf32>
    %15 = vector.broadcast %14 : vector<1x8xf32> to vector<256x8xf32>
    %16 = arith.addf %13, %15 : vector<256x8xf32>
    %17 = vector.shape_cast %16 : vector<256x8xf32> to vector<1x16x16x8xf32>
    %18 = arith.truncf %17 : vector<1x16x16x8xf32> to vector<1x16x16x8xbf16>
    %c0_24 = arith.constant 0 : index
    %c0_25 = arith.constant 0 : index
    %c0_26 = arith.constant 0 : index
    %c0_27 = arith.constant 0 : index
    %19 = vector.load %arg5[%c0_24, %c0_25, %c0_26, %c0_27] : memref<1x16x16x8xbf16, #tpu.memory_space<vmem>>, vector<1x16x16x8xbf16>
    tpu.vector_store %arg5[%c0_24, %c0_25, %c0_26, %c0_27], %18 {strides = array<i32>} : memref<1x16x16x8xbf16, #tpu.memory_space<vmem>>, vector<1x16x16x8xbf16>,
    return
  }
  func.func @transform_0(%arg0: i32, %arg1: i32) -> (i32, i32, i32, i32, i32) {
    %c0_i32 = arith.constant 0 : i32
    %c0_i32_0 = arith.constant 0 : i32
    %c0_i32_1 = arith.constant 0 : i32
    %c0_i32_2 = arith.constant 0 : i32
    return %arg0, %arg1, %c0_i32, %c0_i32_0, %c0_i32_1 : i32, i32, i32, i32, i32
  }
  func.func @transform_1(%arg0: i32, %arg1: i32) -> (i32, i32) {
    %c0_i32 = arith.constant 0 : i32
    %c0_i32_0 = arith.constant 0 : i32
    %c0_i32_1 = arith.constant 0 : i32
    return %c0_i32, %c0_i32_0 : i32, i32
  }
  func.func @transform_2(%arg0: i32, %arg1: i32) -> (i32, i32) {
    %c0_i32 = arith.constant 0 : i32
    %c0_i32_0 = arith.constant 0 : i32
    %c0_i32_1 = arith.constant 0 : i32
    return %c0_i32, %c0_i32_0 : i32, i32
  }
  func.func @transform_3(%arg0: i32, %arg1: i32) -> (i32, i32, i32, i32) {
    %c0_i32 = arith.constant 0 : i32
    %c0_i32_0 = arith.constant 0 : i32
    %c0_i32_1 = arith.constant 0 : i32
    return %arg0, %arg1, %c0_i32, %c0_i32_0 : i32, i32, i32, i32
  }
}

</mosaic_0001>

<bundles_post_ra>
// kernel: tpu_custom_call.1
= control target key start
LH: loop header
LB: loop body
LE: loop exit
PB: predicated region body
PF: predicated region fallthrough
CT: control target
= control target key end

     0   :  { %s2046_s12 = smov 0   ;;  %s2048_s13 = smov 0   ;;  %s2418_s0 = inlined_call_operand.vmem [shape: bf16[2,1,20,16,4], index: 0, kind: input, shape index: {}]   ;;  %s2419_s1 = inlined_call_operand.vmem [shape: bf16[20,8], index: 1, kind: input, shape index: {}]   ;;  %s2420_s2 = inlined_call_operand.vmem [shape: f32[1,8], index: 2, kind: input, shape index: {}]   ;;  %s2421_s3 = inlined_call_operand.vmem [shape: bf16[2,16,16,8], index: 3, kind: output, shape index: {}]  }
   0x1   :  { %s2050_s14 = smov 0  }
   0x2 LB: > { %s25_s15 = sadd.s32 1, %s2016_s13  ;;  %p1529_p0 = scmp.ge.s32.totalorder %s2020_s14, 1  ;;  %s2020_s14 = sphi %s2050_s14, %s13_s14   ;;  %s2016_s13 = sphi %s2048_s13, %s2423_s13   ;;  %s2012_s12 = sphi %s2046_s12, %s2422_s12  }
   0x3   : > { %p27_p1 = scmp.ge.s32.totalorder %s25_s15, 2  ;;  %p157_p2 = scmp.lt.s32.totalorder %s2020_s14, 3 }
   0x5   : > { %s2425_s15 = smov (%p27_p1, %s25_s15), 0  ;;  %p158_p3 = pnand %p1529_p0, %p157_p2 }
   0x6   : > { %p190_p4 = scmp.lt.s32.totalorder (!%p158_p3), %s2012_s12, 1  ;;  %s2022_s20 = smov (!%p158_p3), 4  }
   0x7   : > { %161 = sbr.rel (%p158_p3) target bundleno = 461 (0x1cd), region = 32  ;;  %s2023_s21 = smov (!%p158_p3), 8  }
   0x8   : > { %s2024_s22 = smov (!%p158_p3), 12   ;;  %s2025_s23 = smov (!%p158_p3), 16  }
   0xc   : > { %s2427_s12 = smov (!%p190_p4, %s2012_s12), 1  ;;  %vm1103_vm0 = vcmask 1041408   ;;  %v1984_v36 = vld [vmem:[%s2419_s1 + $0x8] ss:$0 sps:$4 sm:$0x33]   ;;  %v1985_v37 = vld [vmem:[%s2419_s1] sm:$0xff]  }
   0xd   : > { %s1887_s16 = smul.u32 160, %s2427_s12  ;;  %1885 = vmatprep.subr.msk.bf16.mxu0 %vm1103_vm0, %v1984_v36  ;;  %v1105_v39 = vsel %vm1103_vm0, %v1984_v36, 0  ;;  %1886 = vmatprep.subr.msk.bf16.mxu1 %vm1103_vm0, %v1984_v36  ;;  %vm903_vm1 = vcmask 31744   ;;  %vm952_vm2 = vcmask 64512   ;;  %vm985_vm3 = vcmask 97280   ;;  %s1794_s30 = sshll.u32 %s2427_s12, 7 }
   0xe   : > { %1846 = vmatpush3.bf16.msra.mxu0 %v1105_v39  ;;  %1883 = vmatpush3.bf16.msra.mxu1 %v1105_v39  ;;  %vm1018_vm4 = vcmask 130048   ;;  %vm1070_vm5 = vcmask 162816   ;;  %s2312_s6 = scalar_lea.vmem %s2421_s3, %s1794_s30  ;;  %vm1396_vm6 = vcmask 60416  }
   0xf   : > { %s2070_s19 = scalar_lea.vmem %s2418_s0, %s1887_s16  ;;  %1847 = vmatprep.subr.bf16.mxu0 %v1985_v37  ;;  %1882 = vmatprep.subr.bf16.mxu1 %v1985_v37 }
  0x10   : > { %v1916_v0 = vld [vmem:[%s2070_s19 + $0x10] sm:$0xff]   ;;  %v1917_v1 = vld [vmem:[%s2070_s19 + $0x8] sm:$0xff]   ;;  %v1922_v6 = vld [vmem:[%s2070_s19 + $0x58] sm:$0xff]  }
  0x11   : > { %537 = vrot.lane.b32.xlu1 %v1916_v0, %s2022_s20  ;;  %v1918_v2 = vld [vmem:[%s2070_s19 + $0x50] sm:$0xff]   ;;  %535 = vrot.lane.b32.xlu0 %v1917_v1, %s2022_s20  ;;  %v1919_v3 = vld [vmem:[%s2070_s19 + $0x48] sm:$0xff]  }
  0x12   : > { %v1920_v4 = vld [vmem:[%s2070_s19 + $0x50] sm:$0xff]   ;;  %v1923_v7 = vld [vmem:[%s2070_s19 + $0x18] sm:$0xff]   ;;  %v1926_v10 = vld [vmem:[%s2070_s19 + $0x60] sm:$0xff]   ;;  %1848 = vmatpush3.bf16.msra.mxu0 %v1985_v37  ;;  %1884 = vmatpush3.bf16.msra.mxu1 %v1985_v37 }
  0x13   : > { %v1921_v5 = vld [vmem:[%s2070_s19 + $0x10] sm:$0xff]   ;;  %v1924_v8 = vld [vmem:[%s2070_s19 + $0x58] sm:$0xff]   ;;  %v1927_v11 = vld [vmem:[%s2070_s19 + $0x20] sm:$0xff]  }
  0x14   : > { %v1925_v9 = vld [vmem:[%s2070_s19 + $0x18] sm:$0xff]   ;;  %v1928_v12 = vld [vmem:[%s2070_s19 + $0x60] sm:$0xff]   ;;  %v1930_v14 = vld [vmem:[%s2070_s19 + $0x68] sm:$0xff]  }
  0x15   : > { %553 = vrot.lane.b32.xlu1 %v1918_v2, %s2022_s20  ;;  %551 = vrot.lane.b32.xlu0 %v1919_v3, %s2022_s20  ;;  %v1929_v13 = vld [vmem:[%s2070_s19 + $0x20] sm:$0xff]   ;;  %v1931_v15 = vld [vmem:[%s2070_s19 + $0x28] sm:$0xff]  }
  0x16   : > { %v1932_v16 = vld [vmem:[%s2070_s19 + $0x58] sm:$0xff]   ;;  %v1934_v18 = vld [vmem:[%s2070_s19 + $0x60] sm:$0xff]   ;;  %v1938_v22 = vld [vmem:[%s2070_s19 + $0x68] sm:$0xff]  }
  0x17   : > { %v1933_v17 = vld [vmem:[%s2070_s19 + $0x18] sm:$0xff]   ;;  %v1935_v19 = vld [vmem:[%s2070_s19 + $0x20] sm:$0xff]   ;;  %v1939_v23 = vld [vmem:[%s2070_s19 + $0x28] sm:$0xff]  }
  0x18   : > { %v1936_v20 = vld [vmem:[%s2070_s19 + $0x60] sm:$0xff]   ;;  %v1940_v24 = vld [vmem:[%s2070_s19 + $0x68] sm:$0xff]   ;;  %v1942_v26 = vld [vmem:[%s2070_s19 + $0x70] sm:$0xff]  }
  0x19   : > { %663 = vrot.lane.b32.xlu1 %v1920_v4, %s2023_s21  ;;  %647 = vrot.lane.b32.xlu0 %v1921_v5, %s2023_s21  ;;  %v1937_v21 = vld [vmem:[%s2070_s19 + $0x20] sm:$0xff]   ;;  %v1941_v25 = vld [vmem:[%s2070_s19 + $0x28] sm:$0xff]  }
  0x1a   : > { %v1943_v27 = vld [vmem:[%s2070_s19 + $0x30] sm:$0xff]   ;;  %v1946_v30 = vld [vmem:[%s2070_s19 + $0x78] sm:$0xff]   ;;  %v1948_v32 = vld [vmem:[%s2070_s19 + $0x68] sm:$0xff]  }
  0x1b   : > { %v1944_v28 = vld [vmem:[%s2070_s19 + $0x70] sm:$0xff]   ;;  %v1947_v31 = vld [vmem:[%s2070_s19 + $0x38] sm:$0xff]   ;;  %v1949_v33 = vld [vmem:[%s2070_s19 + $0x28] sm:$0xff]  }
  0x1c   : > { %v1945_v29 = vld [vmem:[%s2070_s19 + $0x30] sm:$0xff]   ;;  %v1954_v41 = vld [vmem:[%s2070_s19 + $0x78] sm:$0xff]   ;;  %v1958_v45 = vld [vmem:[%s2070_s19 + $0x80] sm:$0xff]  }
  0x1d   : > { %665 = vrot.lane.b32.xlu1 %v1922_v6, %s2023_s21  ;;  %649 = vrot.lane.b32.xlu0 %v1923_v7, %s2023_s21  ;;  %v1950_v34 = vld [vmem:[%s2070_s19 + $0x70] sm:$0xff]   ;;  %v1955_v42 = vld [vmem:[%s2070_s19 + $0x38] sm:$0xff]  }
  0x1e   : > { %v1951_v35 = vld [vmem:[%s2070_s19 + $0x30] sm:$0xff]   ;;  %v1956_v43 = vld [vmem:[%s2070_s19 + $0x78] sm:$0xff]   ;;  %v1959_v46 = vld [vmem:[%s2070_s19 + $0x40] sm:$0xff]  }
  0x1f   : > { %v1952_v38 = vld [vmem:[%s2070_s19 + $0x70] sm:$0xff]   ;;  %v1957_v44 = vld [vmem:[%s2070_s19 + $0x38] sm:$0xff]   ;;  %v1960_v47 = vld [vmem:[%s2070_s19 + $0x80] sm:$0xff]  }
  0x20   : > { %v1953_v40 = vld [vmem:[%s2070_s19 + $0x30] sm:$0xff]   ;;  %v1961_v48 = vld [vmem:[%s2070_s19 + $0x40] sm:$0xff]   ;;  %v1962_v49 = vld [vmem:[%s2070_s19 + $0x88] sm:$0xff]  }
  0x21   : > { %775 = vrot.lane.b32.xlu1 %v1924_v8, %s2024_s22  ;;  %759 = vrot.lane.b32.xlu0 %v1925_v9, %s2024_s22  ;;  %v1963_v50 = vld [vmem:[%s2070_s19 + $0x48] sm:$0xff]   ;;  %v1964_v51 = vld [vmem:[%s2070_s19 + $0x78] sm:$0xff]  }
  0x22   : > { %v1965_v52 = vld [vmem:[%s2070_s19 + $0x38] sm:$0xff]   ;;  %v1966_v53 = vld [vmem:[%s2070_s19 + $0x80] sm:$0xff]   ;;  %v1970_v57 = vld [vmem:[%s2070_s19 + $0x88] sm:$0xff]  }
  0x23   : > { %v1967_v54 = vld [vmem:[%s2070_s19 + $0x40] sm:$0xff]   ;;  %v1971_v58 = vld [vmem:[%s2070_s19 + $0x48] sm:$0xff]   ;;  %v1976_v61 = vld [vmem:[%s2070_s19 + $0x90] sm:$0xff]  }
  0x24   : > { %v1968_v55 = vld [vmem:[%s2070_s19 + $0x80] sm:$0xff]   ;;  %v1972_v59 = vld [vmem:[%s2070_s19 + $0x88] sm:$0xff]   ;;  %v1977_v62 = vld [vmem:[%s2070_s19 + $0x50] sm:$0xff]  }
  0x25   : > { %777 = vrot.lane.b32.xlu1 %v1926_v10, %s2024_s22  ;;  %761 = vrot.lane.b32.xlu0 %v1927_v11, %s2024_s22  ;;  %v1969_v56 = vld [vmem:[%s2070_s19 + $0x40] sm:$0xff]   ;;  %v1973_v60 = vld [vmem:[%s2070_s19 + $0x48] sm:$0xff]  }
  0x26   : > { %v1980_v1 = vld [vmem:[%s2070_s19 + $0x90] sm:$0xff]   ;;  %v1982_v5 = vld [vmem:[%s2070_s19 + $0x98] sm:$0xff]  }
  0x27   : > { %v1981_v2 = vld [vmem:[%s2070_s19 + $0x50] sm:$0xff]   ;;  %v1983_v6 = vld [vmem:[%s2070_s19 + $0x58] sm:$0xff]  }
  0x29   : > { %887 = vrot.lane.b32.xlu1 %v1928_v12, %s2025_s23  ;;  %871 = vrot.lane.b32.xlu0 %v1929_v13, %s2025_s23  ;;  %v1979_v13 = vld [vmem:[%s2070_s19 + $0x40] sm:$0xff]  }
  0x2d   : > { %889 = vrot.lane.b32.xlu1 %v1930_v14, %s2025_s23  ;;  %873 = vrot.lane.b32.xlu0 %v1931_v15, %s2025_s23  ;;  %v1975_v14 = vld [vmem:[%s2070_s19] sm:$0xff]  }
  0x31   : > { %555 = vrot.lane.b32.xlu1 %v1932_v16, %s2022_s20  ;;  %539 = vrot.lane.b32.xlu0 %v1933_v17, %s2022_s20  ;;  %v1978_v17 = vld [vmem:[%s2070_s19 + $0x48] sm:$0xff]  }
  0x35   : > { %557 = vrot.lane.b32.xlu1 %v1934_v18, %s2022_s20  ;;  %541 = vrot.lane.b32.xlu0 %v1935_v19, %s2022_s20  ;;  %v1974_v19 = vld [vmem:[%s2070_s19 + $0x8] sm:$0xff]  }
  0x39   : > { %667 = vrot.lane.b32.xlu1 %v1936_v20, %s2023_s21  ;;  %651 = vrot.lane.b32.xlu0 %v1937_v21, %s2023_s21 }
  0x3d   : > { %669 = vrot.lane.b32.xlu1 %v1938_v22, %s2023_s21  ;;  %653 = vrot.lane.b32.xlu0 %v1939_v23, %s2023_s21 }
  0x41   : > { %779 = vrot.lane.b32.xlu1 %v1940_v24, %s2024_s22  ;;  %763 = vrot.lane.b32.xlu0 %v1941_v25, %s2024_s22 }
  0x45   : > { %781 = vrot.lane.b32.xlu1 %v1942_v26, %s2024_s22  ;;  %765 = vrot.lane.b32.xlu0 %v1943_v27, %s2024_s22 }
  0x49   : > { %891 = vrot.lane.b32.xlu1 %v1944_v28, %s2025_s23  ;;  %875 = vrot.lane.b32.xlu0 %v1945_v29, %s2025_s23 }
  0x4d   : > { %893 = vrot.lane.b32.xlu1 %v1946_v30, %s2025_s23  ;;  %877 = vrot.lane.b32.xlu0 %v1947_v31, %s2025_s23 }
  0x51   : > { %559 = vrot.lane.b32.xlu1 %v1948_v32, %s2022_s20  ;;  %543 = vrot.lane.b32.xlu0 %v1949_v33, %s2022_s20 }
  0x55   : > { %561 = vrot.lane.b32.xlu1 %v1950_v34, %s2022_s20  ;;  %545 = vrot.lane.b32.xlu0 %v1951_v35, %s2022_s20 }
  0x59   : > { %671 = vrot.lane.b32.xlu1 %v1952_v38, %s2023_s21  ;;  %655 = vrot.lane.b32.xlu0 %v1953_v40, %s2023_s21 }
  0x5d   : > { %673 = vrot.lane.b32.xlu1 %v1954_v41, %s2023_s21  ;;  %657 = vrot.lane.b32.xlu0 %v1955_v42, %s2023_s21 }
  0x61   : > { %783 = vrot.lane.b32.xlu1 %v1956_v43, %s2024_s22  ;;  %767 = vrot.lane.b32.xlu0 %v1957_v44, %s2024_s22 }
  0x65   : > { %785 = vrot.lane.b32.xlu1 %v1958_v45, %s2024_s22  ;;  %769 = vrot.lane.b32.xlu0 %v1959_v46, %s2024_s22 }
  0x69   : > { %895 = vrot.lane.b32.xlu1 %v1960_v47, %s2025_s23  ;;  %879 = vrot.lane.b32.xlu0 %v1961_v48, %s2025_s23 }
  0x6d   : > { %897 = vrot.lane.b32.xlu1 %v1962_v49, %s2025_s23  ;;  %881 = vrot.lane.b32.xlu0 %v1963_v50, %s2025_s23  ;;  %v1986_v49 = vld [vmem:[%s2070_s19 + $0x50] sm:$0xff]  }
  0x6e   : > { %v1987_v50 = vld [vmem:[%s2070_s19 + $0x10] sm:$0xff]  }
  0x71   : > { %563 = vrot.lane.b32.xlu1 %v1964_v51, %s2022_s20  ;;  %547 = vrot.lane.b32.xlu0 %v1965_v52, %s2022_s20 }
  0x75   : > { %565 = vrot.lane.b32.xlu1 %v1966_v53, %s2022_s20  ;;  %549 = vrot.lane.b32.xlu0 %v1967_v54, %s2022_s20  ;;  %v1988_v54 = vld [vmem:[%s2070_s19 + $0x58] sm:$0xff]  }
  0x79   : > { %675 = vrot.lane.b32.xlu1 %v1968_v55, %s2023_s21  ;;  %659 = vrot.lane.b32.xlu0 %v1969_v56, %s2023_s21  ;;  %v1989_v56 = vld [vmem:[%s2070_s19 + $0x18] sm:$0xff]  }
  0x7d   : > { %677 = vrot.lane.b32.xlu1 %v1970_v57, %s2023_s21  ;;  %661 = vrot.lane.b32.xlu0 %v1971_v58, %s2023_s21 }
  0x81   : > { %787 = vrot.lane.b32.xlu1 %v1972_v59, %s2024_s22  ;;  %771 = vrot.lane.b32.xlu0 %v1973_v60, %s2024_s22 }
  0x83   : > { %v538_v63 = vpop.permute.xlu1 %537  ;;  %v536_v0 = vpop.permute.xlu0 %535 }
  0x84   : > { %v906_v20 = vsel %vm903_vm1, %v1975_v14, %v536_v0  ;;  %v909_v30 = vsel %vm903_vm1, %v1974_v19, %v538_v63 }
  0x85   : > { %789 = vrot.lane.b32.xlu1 %v1976_v61, %s2024_s22  ;;  %773 = vrot.lane.b32.xlu0 %v1977_v62, %s2024_s22 }
  0x87   : > { %v554_v3 = vpop.permute.xlu1 %553  ;;  %v552_v4 = vpop.permute.xlu0 %551 }
  0x88   : > { %v930_v18 = vsel %vm903_vm1, %v1979_v13, %v552_v4  ;;  %v933_v28 = vsel %vm903_vm1, %v1978_v17, %v554_v3 }
  0x89   : > { %899 = vrot.lane.b32.xlu1 %v1980_v1, %s2025_s23  ;;  %883 = vrot.lane.b32.xlu0 %v1981_v2, %s2025_s23 }
  0x8b   : > { %v664_v7 = vpop.permute.xlu1 %663  ;;  %v648_v8 = vpop.permute.xlu0 %647 }
  0x8c   : > { %v970_v21 = vsel %vm952_vm2, %v930_v18, %v664_v7  ;;  %v954_v22 = vsel %vm952_vm2, %v906_v20, %v648_v8 }
  0x8d   : > { %901 = vrot.lane.b32.xlu1 %v1982_v5, %s2025_s23  ;;  %885 = vrot.lane.b32.xlu0 %v1983_v6, %s2025_s23 }
  0x8f   : > { %v666_v9 = vpop.permute.xlu1 %665  ;;  %v650_v10 = vpop.permute.xlu0 %649 }
  0x90   : > { %v972_v31 = vsel %vm952_vm2, %v933_v28, %v666_v9  ;;  %v956_v32 = vsel %vm952_vm2, %v909_v30, %v650_v10  ;;  %v1993_v28 = vld [vmem:[%s2070_s19 + $0x28] sm:$0xff]  }
  0x93   : > { %v776_v11 = vpop.permute.xlu1 %775  ;;  %v760_v12 = vpop.permute.xlu0 %759 }
  0x94   : > { %v1003_v23 = vsel %vm985_vm3, %v970_v21, %v776_v11  ;;  %v987_v25 = vsel %vm985_vm3, %v954_v22, %v760_v12  ;;  %v1990_v21 = vld [vmem:[%s2070_s19 + $0x60] sm:$0xff]  }
  0x95   : > { %v1991_v22 = vld [vmem:[%s2070_s19 + $0x20] sm:$0xff]  }
  0x97   : > { %v778_v15 = vpop.permute.xlu1 %777  ;;  %v762_v16 = vpop.permute.xlu0 %761 }
  0x98   : > { %v1005_v33 = vsel %vm985_vm3, %v972_v31, %v778_v15  ;;  %v989_v35 = vsel %vm985_vm3, %v956_v32, %v762_v16 }
  0x9b   : > { %v888_v24 = vpop.permute.xlu1 %887  ;;  %v872_v26 = vpop.permute.xlu0 %871 }
  0x9c   : > { %v1036_v27 = vsel %vm1018_vm4, %v1003_v23, %v888_v24  ;;  %v1020_v29 = vsel %vm1018_vm4, %v987_v25, %v872_v26  ;;  %v1992_v26 = vld [vmem:[%s2070_s19 + $0x68] sm:$0xff]  }
  0x9d   : > { %1865 = vmatprep.mubr.msk.bf16.mxu1 %vm1070_vm5, %v1036_v27  ;;  %1849 = vmatprep.mubr.msk.bf16.mxu0 %vm1070_vm5, %v1020_v29 }
  0x9f   : > { %v890_v34 = vpop.permute.xlu1 %889  ;;  %v874_v37 = vpop.permute.xlu0 %873 }
  0xa0   : > { %v1038_v36 = vsel %vm1018_vm4, %v1005_v33, %v890_v34  ;;  %v1022_v38 = vsel %vm1018_vm4, %v989_v35, %v874_v37 }
  0xa1   : > { %1866 = vmatmul.mubr.msk.bf16.vlgmr.msra.gmra.mxu1 %vm1070_vm5, %v1038_v36  ;;  %1850 = vmatmul.mubr.msk.bf16.vlgmr.msra.gmra.mxu0 %vm1070_vm5, %v1022_v38 }
  0xa3   : > { %v556_v39 = vpop.permute.xlu1 %555  ;;  %v540_v40 = vpop.permute.xlu0 %539 }
  0xa4   : > { %v936_v53 = vsel %vm903_vm1, %v1986_v49, %v556_v39  ;;  %v912_v55 = vsel %vm903_vm1, %v1987_v50, %v540_v40 }
  0xa7   : > { %v558_v41 = vpop.permute.xlu1 %557  ;;  %v542_v42 = vpop.permute.xlu0 %541 }
  0xa8   : > { %v939_v0 = vsel %vm903_vm1, %v1988_v54, %v558_v41  ;;  %v915_v2 = vsel %vm903_vm1, %v1989_v56, %v542_v42 }
  0xab   : > { %v668_v43 = vpop.permute.xlu1 %667  ;;  %v652_v44 = vpop.permute.xlu0 %651 }
  0xac   : > { %v974_v57 = vsel %vm952_vm2, %v936_v53, %v668_v43  ;;  %v958_v58 = vsel %vm952_vm2, %v912_v55, %v652_v44 }
  0xaf   : > { %v670_v45 = vpop.permute.xlu1 %669  ;;  %v654_v46 = vpop.permute.xlu0 %653 }
  0xb0   : > { %v976_v3 = vsel %vm952_vm2, %v939_v0, %v670_v45  ;;  %v960_v4 = vsel %vm952_vm2, %v915_v2, %v654_v46  ;;  %v1997_v0 = vld [vmem:[%s2070_s19 + $0x38] sm:$0xff]  }
  0xb3   : > { %v780_v47 = vpop.permute.xlu1 %779  ;;  %v764_v48 = vpop.permute.xlu0 %763 }
  0xb4   : > { %v1007_v59 = vsel %vm985_vm3, %v974_v57, %v780_v47  ;;  %v991_v61 = vsel %vm985_vm3, %v958_v58, %v764_v48  ;;  %v1994_v57 = vld [vmem:[%s2070_s19 + $0x70] sm:$0xff]  }
  0xb5   : > { %v1995_v58 = vld [vmem:[%s2070_s19 + $0x30] sm:$0xff]  }
  0xb7   : > { %v782_v51 = vpop.permute.xlu1 %781  ;;  %v766_v52 = vpop.permute.xlu0 %765 }
  0xb8   : > { %v1009_v5 = vsel %vm985_vm3, %v976_v3, %v782_v51  ;;  %v993_v7 = vsel %vm985_vm3, %v960_v4, %v766_v52 }
  0xbb   : > { %v892_v60 = vpop.permute.xlu1 %891  ;;  %v876_v63 = vpop.permute.xlu0 %875 }
  0xbc   : > { %v1040_v62 = vsel %vm1018_vm4, %v1007_v59, %v892_v60  ;;  %v1024_v1 = vsel %vm1018_vm4, %v991_v61, %v876_v63 }
  0xbd   : > { %1869 = vmatprep.mubr.msk.bf16.mxu1 %vm1070_vm5, %v1040_v62  ;;  %1853 = vmatprep.mubr.msk.bf16.mxu0 %vm1070_vm5, %v1024_v1  ;;  %v1996_v62 = vld [vmem:[%s2070_s19 + $0x78] sm:$0xff]  }
  0xbf   : > { %v894_v6 = vpop.permute.xlu1 %893  ;;  %v878_v9 = vpop.permute.xlu0 %877 }
  0xc0   : > { %v1042_v8 = vsel %vm1018_vm4, %v1009_v5, %v894_v6  ;;  %v1026_v10 = vsel %vm1018_vm4, %v993_v7, %v878_v9 }
  0xc1   : > { %1870 = vmatmul.mubr.msk.bf16.gmra.mxu1 %vm1070_vm5, %v1042_v8  ;;  %1854 = vmatmul.mubr.msk.bf16.gmra.mxu0 %vm1070_vm5, %v1026_v10 }
  0xc3   : > { %v560_v11 = vpop.permute.xlu1 %559  ;;  %v544_v12 = vpop.permute.xlu0 %543 }
  0xc4   : > { %v942_v25 = vsel %vm903_vm1, %v1990_v21, %v560_v11  ;;  %v918_v27 = vsel %vm903_vm1, %v1991_v22, %v544_v12 }
  0xc7   : > { %v562_v13 = vpop.permute.xlu1 %561  ;;  %v546_v14 = vpop.permute.xlu0 %545 }
  0xc8   : > { %v945_v36 = vsel %vm903_vm1, %v1992_v26, %v562_v13  ;;  %v921_v38 = vsel %vm903_vm1, %v1993_v28, %v546_v14 }
  0xcb   : > { %v672_v15 = vpop.permute.xlu1 %671  ;;  %v656_v16 = vpop.permute.xlu0 %655 }
  0xcc   : > { %v978_v29 = vsel %vm952_vm2, %v942_v25, %v672_v15  ;;  %v962_v30 = vsel %vm952_vm2, %v918_v27, %v656_v16 }
  0xcf   : > { %v674_v17 = vpop.permute.xlu1 %673  ;;  %v658_v18 = vpop.permute.xlu0 %657 }
  0xd0   : > { %v980_v39 = vsel %vm952_vm2, %v945_v36, %v674_v17  ;;  %v964_v40 = vsel %vm952_vm2, %v921_v38, %v658_v18 }
  0xd3   : > { %v784_v19 = vpop.permute.xlu1 %783  ;;  %v768_v20 = vpop.permute.xlu0 %767 }
  0xd4   : > { %v1011_v31 = vsel %vm985_vm3, %v978_v29, %v784_v19  ;;  %v995_v33 = vsel %vm985_vm3, %v962_v30, %v768_v20  ;;  %v2305_v19 = vld [vmem:[%s2420_s2] ss:$0 sm:$0xff] }
  0xd7   : > { %v786_v23 = vpop.permute.xlu1 %785  ;;  %v770_v24 = vpop.permute.xlu0 %769 }
  0xd8   : > { %v1013_v41 = vsel %vm985_vm3, %v980_v39, %v786_v23  ;;  %v997_v43 = vsel %vm985_vm3, %v964_v40, %v770_v24 }
  0xdb   : > { %v896_v32 = vpop.permute.xlu1 %895  ;;  %v880_v35 = vpop.permute.xlu0 %879 }
  0xdc   : > { %v1044_v34 = vsel %vm1018_vm4, %v1011_v31, %v896_v32  ;;  %v1028_v37 = vsel %vm1018_vm4, %v995_v33, %v880_v35 }
  0xdd   : > { %1873 = vmatprep.mubr.msk.bf16.mxu1 %vm1070_vm5, %v1044_v34  ;;  %1857 = vmatprep.mubr.msk.bf16.mxu0 %vm1070_vm5, %v1028_v37 }
  0xdf   : > { %v898_v42 = vpop.permute.xlu1 %897  ;;  %v882_v45 = vpop.permute.xlu0 %881 }
  0xe0   : > { %v1046_v44 = vsel %vm1018_vm4, %v1013_v41, %v898_v42  ;;  %v1030_v46 = vsel %vm1018_vm4, %v997_v43, %v882_v45 }
  0xe1   : > { %1874 = vmatmul.mubr.msk.bf16.gmra.mxu1 %vm1070_vm5, %v1046_v44  ;;  %1858 = vmatmul.mubr.msk.bf16.gmra.mxu0 %vm1070_vm5, %v1030_v46 }
  0xe3   : > { %v564_v47 = vpop.permute.xlu1 %563  ;;  %v548_v48 = vpop.permute.xlu0 %547 }
  0xe4   : > { %v948_v61 = vsel %vm903_vm1, %v1994_v57, %v564_v47  ;;  %v924_v63 = vsel %vm903_vm1, %v1995_v58, %v548_v48 }
  0xe7   : > { %v566_v49 = vpop.permute.xlu1 %565  ;;  %v550_v50 = vpop.permute.xlu0 %549 }
  0xe8   : > { %v951_v8 = vsel %vm903_vm1, %v1996_v62, %v566_v49  ;;  %v927_v10 = vsel %vm903_vm1, %v1997_v0, %v550_v50 }
  0xeb   : > { %v676_v51 = vpop.permute.xlu1 %675  ;;  %v660_v52 = vpop.permute.xlu0 %659 }
  0xec   : > { %v982_v1 = vsel %vm952_vm2, %v948_v61, %v676_v51  ;;  %v966_v2 = vsel %vm952_vm2, %v924_v63, %v660_v52 }
  0xef   : > { %v678_v53 = vpop.permute.xlu1 %677  ;;  %v662_v54 = vpop.permute.xlu0 %661 }
  0xf0   : > { %v984_v11 = vsel %vm952_vm2, %v951_v8, %v678_v53  ;;  %v968_v12 = vsel %vm952_vm2, %v927_v10, %v662_v54 }
  0xf3   : > { %v788_v55 = vpop.permute.xlu1 %787  ;;  %v772_v56 = vpop.permute.xlu0 %771 }
  0xf4   : > { %v1015_v3 = vsel %vm985_vm3, %v982_v1, %v788_v55  ;;  %v999_v5 = vsel %vm985_vm3, %v966_v2, %v772_v56 }
  0xf7   : > { %v790_v59 = vpop.permute.xlu1 %789  ;;  %v774_v60 = vpop.permute.xlu0 %773 }
  0xf8   : > { %v1017_v13 = vsel %vm985_vm3, %v984_v11, %v790_v59  ;;  %v1001_v15 = vsel %vm985_vm3, %v968_v12, %v774_v60 }
  0xfb   : > { %v900_v4 = vpop.permute.xlu1 %899  ;;  %v884_v7 = vpop.permute.xlu0 %883 }
  0xfc   : > { %v1048_v6 = vsel %vm1018_vm4, %v1015_v3, %v900_v4  ;;  %v1032_v9 = vsel %vm1018_vm4, %v999_v5, %v884_v7 }
  0xfd   : > { %1877 = vmatprep.mubr.msk.bf16.mxu1 %vm1070_vm5, %v1048_v6  ;;  %1861 = vmatprep.mubr.msk.bf16.mxu0 %vm1070_vm5, %v1032_v9 }
  0xff   : > { %v902_v14 = vpop.permute.xlu1 %901  ;;  %v886_v17 = vpop.permute.xlu0 %885 }
 0x100   : > { %v1050_v16 = vsel %vm1018_vm4, %v1017_v13, %v902_v14  ;;  %v1034_v18 = vsel %vm1018_vm4, %v1001_v15, %v886_v17 }
 0x101   : > { %1878 = vmatmul.mubr.msk.bf16.gmra.mxu1 %vm1070_vm5, %v1050_v16  ;;  %1862 = vmatmul.mubr.msk.bf16.gmra.mxu0 %vm1070_vm5, %v1034_v18 }
 0x161   : > { %v1867_v20 = vpop.f32.mrf.mxu1  ;;  %v1851_v21 = vpop.f32.mrf.mxu0 }
 0x162   : > { %v1214_v22 = vadd.f32 %v1867_v20, %v2305_v19  ;;  %v1150_v23 = vadd.f32 %v1851_v21, %v2305_v19 }
 0x163   : > { %v1205_v24 = vpop.f32.mrf.mxu1  ;;  %v1141_v26 = vpop.f32.mrf.mxu0 }
 0x164   : > { %v1813_v25 = vpack.c.bf16 %v1214_v22, %v1214_v22  ;;  %v1206_v27 = vadd.f32 %v2305_v19, %v1205_v24  ;;  %v1797_v28 = vpack.c.bf16 %v1150_v23, %v1150_v23  ;;  %v1142_v29 = vadd.f32 %v2305_v19, %v1141_v26 }
 0x165   : > { %v1868_v30 = vpop.f32.mrf.mxu1  ;;  %v1852_v32 = vpop.f32.mrf.mxu0 }
 0x166   : > { %1415 = vst.msk [vmem:[%s2312_s6 + $0x48] sm:$0xf] %vm1396_vm6, %v1813_v25  ;;  %v1811_v31 = vpack.c.bf16 %v1206_v27, %v1206_v27  ;;  %v1217_v33 = vadd.f32 %v1868_v30, %v2305_v19  ;;  %1399 = vst.msk [vmem:[%s2312_s6 + $0x8] sm:$0xf] %vm1396_vm6, %v1797_v28  ;;  %v1795_v34 = vpack.c.bf16 %v1142_v29, %v1142_v29 }
 0x167   : > { %v1153_v35 = vadd.f32 %v1852_v32, %v2305_v19  ;;  %v1208_v36 = vpop.f32.mrf.mxu1  ;;  %v1144_v38 = vpop.f32.mrf.mxu0 }
 0x168   : > { %1413 = vst.msk [vmem:[%s2312_s6 + $0x40] sm:$0xf] %vm1396_vm6, %v1811_v31  ;;  %v1814_v37 = vpack.c.bf16 %v1217_v33, %v1217_v33  ;;  %v1209_v39 = vadd.f32 %v2305_v19, %v1208_v36  ;;  %1397 = vst.msk [vmem:[%s2312_s6] sm:$0xf] %vm1396_vm6, %v1795_v34  ;;  %v1145_v41 = vadd.f32 %v2305_v19, %v1144_v38 }
 0x169   : > { %v1798_v40 = vpack.c.bf16 %v1153_v35, %v1153_v35 }
 0x16a   : > { %1416 = vst.msk [vmem:[%s2312_s6 + $0x4c] sm:$0xf] %vm1396_vm6, %v1814_v37  ;;  %v1812_v42 = vpack.c.bf16 %v1209_v39, %v1209_v39  ;;  %v1796_v43 = vpack.c.bf16 %v1145_v41, %v1145_v41 }
 0x16b   : > { %1400 = vst.msk [vmem:[%s2312_s6 + $0xc] sm:$0xf] %vm1396_vm6, %v1798_v40 }
 0x16c   : > { %1414 = vst.msk [vmem:[%s2312_s6 + $0x44] sm:$0xf] %vm1396_vm6, %v1812_v42  ;;  %1398 = vst.msk [vmem:[%s2312_s6 + $0x4] sm:$0xf] %vm1396_vm6, %v1796_v43 }
 0x181   : > { %v1871_v44 = vpop.f32.mrf.mxu1  ;;  %v1855_v45 = vpop.f32.mrf.mxu0 }
 0x182   : > { %v1230_v46 = vadd.f32 %v1871_v44, %v2305_v19  ;;  %v1166_v47 = vadd.f32 %v1855_v45, %v2305_v19 }
 0x183   : > { %v1221_v48 = vpop.f32.mrf.mxu1  ;;  %v1157_v50 = vpop.f32.mrf.mxu0 }
 0x184   : > { %v1817_v49 = vpack.c.bf16 %v1230_v46, %v1230_v46  ;;  %v1222_v51 = vadd.f32 %v2305_v19, %v1221_v48  ;;  %v1801_v52 = vpack.c.bf16 %v1166_v47, %v1166_v47  ;;  %v1158_v53 = vadd.f32 %v2305_v19, %v1157_v50 }
 0x185   : > { %v1872_v54 = vpop.f32.mrf.mxu1  ;;  %v1856_v56 = vpop.f32.mrf.mxu0 }
 0x186   : > { %1419 = vst.msk [vmem:[%s2312_s6 + $0x58] sm:$0xf] %vm1396_vm6, %v1817_v49  ;;  %v1815_v55 = vpack.c.bf16 %v1222_v51, %v1222_v51  ;;  %v1233_v57 = vadd.f32 %v1872_v54, %v2305_v19  ;;  %1403 = vst.msk [vmem:[%s2312_s6 + $0x18] sm:$0xf] %vm1396_vm6, %v1801_v52  ;;  %v1799_v58 = vpack.c.bf16 %v1158_v53, %v1158_v53 }
 0x187   : > { %v1169_v59 = vadd.f32 %v1856_v56, %v2305_v19  ;;  %v1224_v60 = vpop.f32.mrf.mxu1  ;;  %v1160_v62 = vpop.f32.mrf.mxu0 }
 0x188   : > { %1417 = vst.msk [vmem:[%s2312_s6 + $0x50] sm:$0xf] %vm1396_vm6, %v1815_v55  ;;  %v1818_v61 = vpack.c.bf16 %v1233_v57, %v1233_v57  ;;  %v1225_v63 = vadd.f32 %v2305_v19, %v1224_v60  ;;  %1401 = vst.msk [vmem:[%s2312_s6 + $0x10] sm:$0xf] %vm1396_vm6, %v1799_v58  ;;  %v1161_v1 = vadd.f32 %v2305_v19, %v1160_v62 }
 0x189   : > { %v1802_v0 = vpack.c.bf16 %v1169_v59, %v1169_v59 }
 0x18a   : > { %1420 = vst.msk [vmem:[%s2312_s6 + $0x5c] sm:$0xf] %vm1396_vm6, %v1818_v61  ;;  %v1816_v2 = vpack.c.bf16 %v1225_v63, %v1225_v63  ;;  %v1800_v3 = vpack.c.bf16 %v1161_v1, %v1161_v1 }
 0x18b   : > { %1404 = vst.msk [vmem:[%s2312_s6 + $0x1c] sm:$0xf] %vm1396_vm6, %v1802_v0 }
 0x18c   : > { %1418 = vst.msk [vmem:[%s2312_s6 + $0x54] sm:$0xf] %vm1396_vm6, %v1816_v2  ;;  %1402 = vst.msk [vmem:[%s2312_s6 + $0x14] sm:$0xf] %vm1396_vm6, %v1800_v3 }
 0x1a1   : > { %v1875_v4 = vpop.f32.mrf.mxu1  ;;  %v1859_v5 = vpop.f32.mrf.mxu0 }
 0x1a2   : > { %v1246_v6 = vadd.f32 %v1875_v4, %v2305_v19  ;;  %v1182_v7 = vadd.f32 %v1859_v5, %v2305_v19 }
 0x1a3   : > { %v1237_v8 = vpop.f32.mrf.mxu1  ;;  %v1173_v10 = vpop.f32.mrf.mxu0 }
 0x1a4   : > { %v1821_v9 = vpack.c.bf16 %v1246_v6, %v1246_v6  ;;  %v1238_v11 = vadd.f32 %v2305_v19, %v1237_v8  ;;  %v1805_v12 = vpack.c.bf16 %v1182_v7, %v1182_v7  ;;  %v1174_v13 = vadd.f32 %v2305_v19, %v1173_v10 }
 0x1a5   : > { %v1876_v14 = vpop.f32.mrf.mxu1  ;;  %v1860_v16 = vpop.f32.mrf.mxu0 }
 0x1a6   : > { %1423 = vst.msk [vmem:[%s2312_s6 + $0x68] sm:$0xf] %vm1396_vm6, %v1821_v9  ;;  %v1819_v15 = vpack.c.bf16 %v1238_v11, %v1238_v11  ;;  %v1249_v17 = vadd.f32 %v1876_v14, %v2305_v19  ;;  %1407 = vst.msk [vmem:[%s2312_s6 + $0x28] sm:$0xf] %vm1396_vm6, %v1805_v12  ;;  %v1803_v18 = vpack.c.bf16 %v1174_v13, %v1174_v13 }
 0x1a7   : > { %v1185_v20 = vadd.f32 %v1860_v16, %v2305_v19  ;;  %v1240_v21 = vpop.f32.mrf.mxu1  ;;  %v1176_v23 = vpop.f32.mrf.mxu0 }
 0x1a8   : > { %1421 = vst.msk [vmem:[%s2312_s6 + $0x60] sm:$0xf] %vm1396_vm6, %v1819_v15  ;;  %v1822_v22 = vpack.c.bf16 %v1249_v17, %v1249_v17  ;;  %v1241_v24 = vadd.f32 %v2305_v19, %v1240_v21  ;;  %1405 = vst.msk [vmem:[%s2312_s6 + $0x20] sm:$0xf] %vm1396_vm6, %v1803_v18  ;;  %v1177_v26 = vadd.f32 %v2305_v19, %v1176_v23 }
 0x1a9   : > { %v1806_v25 = vpack.c.bf16 %v1185_v20, %v1185_v20 }
 0x1aa   : > { %1424 = vst.msk [vmem:[%s2312_s6 + $0x6c] sm:$0xf] %vm1396_vm6, %v1822_v22  ;;  %v1820_v27 = vpack.c.bf16 %v1241_v24, %v1241_v24  ;;  %v1804_v28 = vpack.c.bf16 %v1177_v26, %v1177_v26 }
 0x1ab   : > { %1408 = vst.msk [vmem:[%s2312_s6 + $0x2c] sm:$0xf] %vm1396_vm6, %v1806_v25 }
 0x1ac   : > { %1422 = vst.msk [vmem:[%s2312_s6 + $0x64] sm:$0xf] %vm1396_vm6, %v1820_v27  ;;  %1406 = vst.msk [vmem:[%s2312_s6 + $0x24] sm:$0xf] %vm1396_vm6, %v1804_v28 }
 0x1c1   : > { %v1879_v29 = vpop.f32.mrf.mxu1  ;;  %v1863_v30 = vpop.f32.mrf.mxu0 }
 0x1c2   : > { %v1262_v31 = vadd.f32 %v1879_v29, %v2305_v19  ;;  %v1198_v32 = vadd.f32 %v1863_v30, %v2305_v19 }
 0x1c3   : > { %v1253_v33 = vpop.f32.mrf.mxu1  ;;  %v1189_v35 = vpop.f32.mrf.mxu0 }
 0x1c4   : > { %v1825_v34 = vpack.c.bf16 %v1262_v31, %v1262_v31  ;;  %v1254_v36 = vadd.f32 %v2305_v19, %v1253_v33  ;;  %v1809_v37 = vpack.c.bf16 %v1198_v32, %v1198_v32  ;;  %v1190_v38 = vadd.f32 %v2305_v19, %v1189_v35 }
 0x1c5   : > { %v1880_v39 = vpop.f32.mrf.mxu1  ;;  %v1864_v41 = vpop.f32.mrf.mxu0 }
 0x1c6   : > { %1427 = vst.msk [vmem:[%s2312_s6 + $0x78] sm:$0xf] %vm1396_vm6, %v1825_v34  ;;  %v1823_v40 = vpack.c.bf16 %v1254_v36, %v1254_v36  ;;  %v1265_v42 = vadd.f32 %v1880_v39, %v2305_v19  ;;  %1411 = vst.msk [vmem:[%s2312_s6 + $0x38] sm:$0xf] %vm1396_vm6, %v1809_v37  ;;  %v1807_v43 = vpack.c.bf16 %v1190_v38, %v1190_v38 }
 0x1c7   : > { %v1201_v44 = vadd.f32 %v1864_v41, %v2305_v19  ;;  %v1256_v45 = vpop.f32.mrf.mxu1  ;;  %v1192_v47 = vpop.f32.mrf.mxu0 }
 0x1c8   : > { %1425 = vst.msk [vmem:[%s2312_s6 + $0x70] sm:$0xf] %vm1396_vm6, %v1823_v40  ;;  %v1826_v46 = vpack.c.bf16 %v1265_v42, %v1265_v42  ;;  %v1257_v48 = vadd.f32 %v2305_v19, %v1256_v45  ;;  %1409 = vst.msk [vmem:[%s2312_s6 + $0x30] sm:$0xf] %vm1396_vm6, %v1807_v43  ;;  %v1193_v50 = vadd.f32 %v2305_v19, %v1192_v47 }
 0x1c9   : > { %v1810_v49 = vpack.c.bf16 %v1201_v44, %v1201_v44 }
 0x1ca   : > { %1428 = vst.msk [vmem:[%s2312_s6 + $0x7c] sm:$0xf] %vm1396_vm6, %v1826_v46  ;;  %v1824_v51 = vpack.c.bf16 %v1257_v48, %v1257_v48  ;;  %v1808_v52 = vpack.c.bf16 %v1193_v50, %v1193_v50 }
 0x1cb   : > { %1412 = vst.msk [vmem:[%s2312_s6 + $0x3c] sm:$0xf] %vm1396_vm6, %v1810_v49 }
 0x1cc   : > { %1426 = vst.msk [vmem:[%s2312_s6 + $0x74] sm:$0xf] %vm1396_vm6, %v1824_v51  ;;  %1410 = vst.msk [vmem:[%s2312_s6 + $0x34] sm:$0xf] %vm1396_vm6, %v1808_v52 }
 0x1cd PF: > { %s13_s14 = sadd.s32 1, %s2020_s14   ;;  %s2422_s12 = smov %s2016_s13 }
 0x1ce   : > { %p10_p5 = scmp.ge.s32.totalorder %s13_s14, 4   ;;  %s2423_s13 = smov %s2425_s15 }
 0x1d0   :  { %12 = sbr.rel (!%p10_p5) target bundleno = 2 (0x2), region = 66 }

</bundles_post_ra>
